<compile_context>
chip_gen: v7x
topology: tpu7x:2x2x1
jax: 0.10.0
libtpu: 0.0.40
codegen_flags: <defaults>
</compile_context>

<pallas_src>
import functools
import math

import jax
import jax.numpy as jnp
from jax.experimental import pallas as pl
from jax.experimental.pallas import tpu as pltpu


def _lora_qkv_kernel(x_ref, wt_ref, bias_ref, at_ref, bblk_ref, o_ref,
                     acc_ref, xa_ref):
    """One (tm, tn) output tile, reduced over the K (= in_dim) grid axis.

    x_ref    : (tm, tk)        activations tile
    wt_ref   : (tk, tn)        pre-transposed dense weight tile (W.T layout)
    bias_ref : (1, tn)         dense bias tile
    at_ref   : (tk, r3p)       fused, lane-padded LoRA-A tile (A_all.T layout)
    bblk_ref : (r3p, tn)       pre-scaled block-diagonal LoRA-B tile
    o_ref    : (tm, tn)        output tile
    acc_ref  : (tm, tn)  f32   dense accumulator (scratch)
    xa_ref   : (tm, r3p) f32   x @ A_all.T accumulator (scratch, reused over j)
    """
    j = pl.program_id(1)
    k = pl.program_id(2)

    @pl.when(k == 0)
    def _():
        acc_ref[...] = jnp.zeros_like(acc_ref)

    x = x_ref[...]
    acc_ref[...] += jnp.dot(x, wt_ref[...], preferred_element_type=jnp.float32)

    # xa = x @ A_all.T is independent of the output-column tile j.  The j grid
    # axis is "arbitrary" (sequential per core), so compute xa only on the
    # first j sweep and reuse it from VMEM scratch for j > 0.
    @pl.when(j == 0)
    def _():
        @pl.when(k == 0)
        def _():
            xa_ref[...] = jnp.zeros_like(xa_ref)
        xa_ref[...] += jnp.dot(x, at_ref[...],
                               preferred_element_type=jnp.float32)

    @pl.when(k == pl.num_programs(2) - 1)
    def _():
        # Block-diagonal, pre-scaled B makes xa @ B equal to
        # concat_i(x @ A_i.T @ B_i.T * scaling) restricted to this tile's
        # columns.  Bias is added exactly once here.
        lora = jnp.dot(xa_ref[...], bblk_ref[...],
                       preferred_element_type=jnp.float32)
        o_ref[...] = (acc_ref[...] + bias_ref[...] + lora).astype(o_ref.dtype)


def _pick_tile(dim, candidates):
    for c in candidates:
        if c <= dim and dim % c == 0:
            return c
    return dim


def lora_qkv_forward(x, w, bias, a_stack, b_stack, *, lora_alpha, r,
                     tm=None, tn=None, tk=None):
    """x: (..., in_dim); w: (out_dim, in_dim) [PyTorch Linear layout];
    bias: (out_dim,); a_stack: (3, r, in_dim); b_stack: (3, out_dim // 3, r)."""
    *lead, in_dim = x.shape
    out_dim = w.shape[0]
    d3 = out_dim // 3
    r3 = 3 * r
    r3p = ((r3 + 127) // 128) * 128            # lane-pad the rank dimension
    scaling = lora_alpha / r

    x2d = x.reshape(-1, in_dim)
    M = x2d.shape[0]
    Mp = ((M + 7) // 8) * 8                    # sublane-pad the token dimension
    if Mp != M:
        x2d = jnp.pad(x2d, ((0, Mp - M), (0, 0)))

    # --- One-time wrapper-side relayouts (plain XLA, outside the hot kernel) ---
    wt = w.T                                         # (K, N): MXU-ready
    bias2d = bias.reshape(1, out_dim)
    a_all_t = jnp.zeros((in_dim, r3p), dtype=w.dtype)
    a_all_t = a_all_t.at[:, :r3].set(a_stack.reshape(r3, in_dim).T)
    # Pre-scaled block-diagonal LoRA-B: (r3p, out_dim).
    b_block = jnp.zeros((r3p, out_dim), dtype=w.dtype)
    for i in range(3):
        b_block = b_block.at[i * r:(i + 1) * r, i * d3:(i + 1) * d3].set(
            b_stack[i].T * scaling)

    # Tile selection: lane-dense (multiples of 128) on N/K; 8-aligned on M.
    tm = tm or _pick_tile(Mp, (256, 128, 64, 32, 16, 8))
    tn = tn or _pick_tile(out_dim, (512, 256, 128))
    tk = tk or _pick_tile(in_dim, (512, 256, 128))
    assert Mp % tm == 0 and out_dim % tn == 0 and in_dim % tk == 0, (
        "in_dim / out_dim must be divisible by the chosen tk / tn tiles")

    grid = (Mp // tm, out_dim // tn, in_dim // tk)
    nk = grid[2]

    # LoRA-A tiles are only consumed on the j == 0 sweep; pin the block index
    # for j > 0 so Pallas skips their DMA entirely (no wasted HBM bandwidth).
    def at_index(i, j, k):
        return (jnp.where(j == 0, k, nk - 1), 0)

    itemsize = jnp.dtype(x.dtype).itemsize
    flops = (2 * Mp * out_dim * in_dim          # dense matmul
             + 2 * Mp * in_dim * r3p            # x @ A_all.T (once per row block)
             + 2 * Mp * r3p * out_dim)          # xa @ B_block (epilogue)
    bytes_accessed = itemsize * (x2d.size + wt.size + bias2d.size
                                 + a_all_t.size + b_block.size + Mp * out_dim)

    out = pl.pallas_call(
        _lora_qkv_kernel,
        out_shape=jax.ShapeDtypeStruct((Mp, out_dim), x.dtype),
        grid_spec=pltpu.PrefetchScalarGridSpec(
            num_scalar_prefetch=0,
            grid=grid,
            in_specs=[
                pl.BlockSpec((tm, tk), lambda i, j, k: (i, k)),    # x
                pl.BlockSpec((tk, tn), lambda i, j, k: (k, j)),    # W.T
                pl.BlockSpec((1, tn), lambda i, j, k: (0, j)),     # bias
                pl.BlockSpec((tk, r3p), at_index),                 # A_all.T
                pl.BlockSpec((r3p, tn), lambda i, j, k: (0, j)),   # block-diag B
            ],
            out_specs=pl.BlockSpec((tm, tn), lambda i, j, k: (i, j)),
            scratch_shapes=[
                pltpu.VMEM((tm, tn), jnp.float32),    # dense accumulator
                pltpu.VMEM((tm, r3p), jnp.float32),   # x @ A_all.T accumulator
            ],
        ),
        compiler_params=pltpu.CompilerParams(
            # j must stay sequential per core so the xa scratch written on the
            # j == 0 sweep is valid for j > 0; megacore parallelism comes from i.
            dimension_semantics=("parallel", "arbitrary", "arbitrary"),
        ),
        cost_estimate=pl.CostEstimate(flops=flops, transcendentals=0,
                                      bytes_accessed=bytes_accessed),
    )(x2d, wt, bias2d, a_all_t, b_block)

    if Mp != M:
        out = out[:M]
    return out.reshape(*lead, out_dim)


def _reference(x2d, w, b, a_stack, b_stack, lora_alpha, r):
    scaling = lora_alpha / r
    base = x2d @ w.T + b
    lora = [(x2d @ a_stack[i].T) @ b_stack[i].T * scaling for i in range(3)]
    return base + jnp.concatenate(lora, axis=-1)


if __name__ == "__main__":
    # Small but tile-friendly shapes consistent with the module's forward.
    batch, seq = 2, 8
    in_dim = 256
    out_dim = 384            # divisible by 3 -> per-branch slab d3 = 128 (lane-dense)
    r = 4
    lora_alpha = 1.0
    d3 = out_dim // 3

    key = jax.random.PRNGKey(0)
    kx, kw, kb, ka, kbm = jax.random.split(key, 5)

    x = jax.random.normal(kx, (batch, seq, in_dim), dtype=jnp.float32)

    # Original Linear params (kaiming-uniform-like deterministic init).
    bound = 1.0 / math.sqrt(in_dim)
    w = jax.random.uniform(kw, (out_dim, in_dim), minval=-bound, maxval=bound,
                           dtype=jnp.float32)
    bias = jax.random.uniform(kb, (out_dim,), minval=-bound, maxval=bound,
                              dtype=jnp.float32)

    # LoRA A: kaiming_uniform(a=sqrt(5)) -> uniform(-1/sqrt(in_dim), 1/sqrt(in_dim)).
    a_stack = jax.random.uniform(ka, (3, r, in_dim), minval=-bound, maxval=bound,
                                 dtype=jnp.float32)
    # Module zero-inits B; use small nonzero values so the LoRA path of the
    # kernel is actually exercised (forward semantics unchanged).
    b_stack = 0.1 * jax.random.normal(kbm, (3, d3, r), dtype=jnp.float32)

    fwd = jax.jit(functools.partial(lora_qkv_forward, lora_alpha=lora_alpha,
                                    r=r, tm=16, tn=128, tk=128))   # grid (1, 3, 2)
    out = jax.block_until_ready(fwd(x, w, bias, a_stack, b_stack))

    ref = _reference(x.reshape(-1, in_dim), w, bias, a_stack, b_stack,
                     lora_alpha, r).reshape(batch, seq, out_dim)

    assert out.shape == (batch, seq, out_dim)
    max_err = float(jnp.max(jnp.abs(out - ref)))
    assert jnp.allclose(out, ref, atol=2e-2, rtol=2e-2), (
        f"mismatch vs reference, max|err|={max_err}")

    # TODO(synk): head_first=True path (per-head interleave) is pure reshape
    # glue around the same matmuls and is not implemented in-kernel.
    print("KERNEL_OK")
</pallas_src>

<mosaic_0001>
module attributes {stable_mosaic.version = 11 : i64} {
  func.func @_lora_qkv_kernel(%arg0: i32, %arg1: i32, %arg2: i32, %arg3: memref<16x128xf32, #tpu.memory_space<vmem>>, %arg4: memref<128x128xf32, #tpu.memory_space<vmem>>, %arg5: memref<1x128xf32, #tpu.memory_space<vmem>>, %arg6: memref<128x128xf32, #tpu.memory_space<vmem>>, %arg7: memref<128x128xf32, #tpu.memory_space<vmem>>, %arg8: memref<16x128xf32, #tpu.memory_space<vmem>>, %arg9: memref<16x128xf32, #tpu.memory_space<vmem>>, %arg10: memref<16x128xf32, #tpu.memory_space<vmem>>) attributes {dimension_semantics = [#tpu.dimension_semantics<parallel>, #tpu.dimension_semantics<arbitrary>, #tpu.dimension_semantics<arbitrary>], iteration_bounds = array<i64: 1, 3, 2>, scalar_prefetch = 0 : i64, scratch_operands = 2 : i64, tpu.core_type = #tpu.core_type<tc>, window_params = [{transform_indices = @transform_0, window_bounds = array<i64: 16, 128>}, {transform_indices = @transform_1, window_bounds = array<i64: 128, 128>}, {transform_indices = @transform_2, window_bounds = array<i64: 1, 128>}, {transform_indices = @transform_3, window_bounds = array<i64: 128, 128>}, {transform_indices = @transform_4, window_bounds = array<i64: 128, 128>}, {transform_indices = @transform_5, window_bounds = array<i64: 16, 128>}]} {
    %c0_i32 = arith.constant 0 : i32
    %0 = arith.cmpi eq, %arg2, %c0_i32 : i32
    %1 = arith.extui %0 : i1 to i32
    %c0_i32_0 = arith.constant 0 : i32
    %2 = arith.cmpi ne, %1, %c0_i32_0 : i32
    scf.if %2 {
      %cst_11 = arith.constant 0.000000e+00 : f32
      %15 = vector.broadcast %cst_11 : f32 to vector<16x128xf32>
      %c0_12 = arith.constant 0 : index
      %c0_13 = arith.constant 0 : index
      %16 = vector.load %arg9[%c0_12, %c0_13] : memref<16x128xf32, #tpu.memory_space<vmem>>, vector<16x128xf32>
      tpu.vector_store %arg9[%c0_12, %c0_13], %15 {strides = array<i32>} : memref<16x128xf32, #tpu.memory_space<vmem>>, vector<16x128xf32>,
    } else {
    }
    %c0 = arith.constant 0 : index
    %c0_1 = arith.constant 0 : index
    %3 = vector.load %arg3[%c0, %c0_1] : memref<16x128xf32, #tpu.memory_space<vmem>>, vector<16x128xf32>
    %c0_2 = arith.constant 0 : index
    %c0_3 = arith.constant 0 : index
    %4 = vector.load %arg9[%c0_2, %c0_3] : memref<16x128xf32, #tpu.memory_space<vmem>>, vector<16x128xf32>
    %c0_4 = arith.constant 0 : index
    %c0_5 = arith.constant 0 : index
    %5 = vector.load %arg4[%c0_4, %c0_5] : memref<128x128xf32, #tpu.memory_space<vmem>>, vector<128x128xf32>
    %cst = arith.constant dense<0.000000e+00> : vector<16x128xf32>
    %6 = tpu.matmul %3, %5, %cst {dimension_numbers = #tpu.dot_dimension_numbers<[1], [0], [0], [1], [0, 0, 1, 1], [], []>} : vector<16x128xf32>, vector<128x128xf32>, vector<16x128xf32> -> vector<16x128xf32>
    %7 = arith.addf %4, %6 : vector<16x128xf32>
    %c0_6 = arith.constant 0 : index
    %c0_7 = arith.constant 0 : index
    %8 = vector.load %arg9[%c0_6, %c0_7] : memref<16x128xf32, #tpu.memory_space<vmem>>, vector<16x128xf32>
    tpu.vector_store %arg9[%c0_6, %c0_7], %7 {strides = array<i32>} : memref<16x128xf32, #tpu.memory_space<vmem>>, vector<16x128xf32>,
    %c0_i32_8 = arith.constant 0 : i32
    %9 = arith.cmpi eq, %arg1, %c0_i32_8 : i32
    %10 = arith.extui %9 : i1 to i32
    %c0_i32_9 = arith.constant 0 : i32
    %11 = arith.cmpi ne, %10, %c0_i32_9 : i32
    scf.if %11 {
      %c0_i32_11 = arith.constant 0 : i32
      %15 = arith.cmpi eq, %arg2, %c0_i32_11 : i32
      %16 = arith.extui %15 : i1 to i32
      %c0_i32_12 = arith.constant 0 : i32
      %17 = arith.cmpi ne, %16, %c0_i32_12 : i32
      scf.if %17 {
        %cst_20 = arith.constant 0.000000e+00 : f32
        %23 = vector.broadcast %cst_20 : f32 to vector<16x128xf32>
        %c0_21 = arith.constant 0 : index
        %c0_22 = arith.constant 0 : index
        %24 = vector.load %arg10[%c0_21, %c0_22] : memref<16x128xf32, #tpu.memory_space<vmem>>, vector<16x128xf32>
        tpu.vector_store %arg10[%c0_21, %c0_22], %23 {strides = array<i32>} : memref<16x128xf32, #tpu.memory_space<vmem>>, vector<16x128xf32>,
      } else {
      }
      %c0_13 = arith.constant 0 : index
      %c0_14 = arith.constant 0 : index
      %18 = vector.load %arg10[%c0_13, %c0_14] : memref<16x128xf32, #tpu.memory_space<vmem>>, vector<16x128xf32>
      %c0_15 = arith.constant 0 : index
      %c0_16 = arith.constant 0 : index
      %19 = vector.load %arg6[%c0_15, %c0_16] : memref<128x128xf32, #tpu.memory_space<vmem>>, vector<128x128xf32>
      %cst_17 = arith.constant dense<0.000000e+00> : vector<16x128xf32>
      %20 = tpu.matmul %3, %19, %cst_17 {dimension_numbers = #tpu.dot_dimension_numbers<[1], [0], [0], [1], [0, 0, 1, 1], [], []>} : vector<16x128xf32>, vector<128x128xf32>, vector<16x128xf32> -> vector<16x128xf32>
      %21 = arith.addf %18, %20 : vector<16x128xf32>
      %c0_18 = arith.constant 0 : index
      %c0_19 = arith.constant 0 : index
      %22 = vector.load %arg10[%c0_18, %c0_19] : memref<16x128xf32, #tpu.memory_space<vmem>>, vector<16x128xf32>
      tpu.vector_store %arg10[%c0_18, %c0_19], %21 {strides = array<i32>} : memref<16x128xf32, #tpu.memory_space<vmem>>, vector<16x128xf32>,
    } else {
    }
    %c1_i32 = arith.constant 1 : i32
    %12 = arith.cmpi eq, %arg2, %c1_i32 : i32
    %13 = arith.extui %12 : i1 to i32
    %c0_i32_10 = arith.constant 0 : i32
    %14 = arith.cmpi ne, %13, %c0_i32_10 : i32
    scf.if %14 {
      %c0_11 = arith.constant 0 : index
      %c0_12 = arith.constant 0 : index
      %15 = vector.load %arg10[%c0_11, %c0_12] : memref<16x128xf32, #tpu.memory_space<vmem>>, vector<16x128xf32>
      %c0_13 = arith.constant 0 : index
      %c0_14 = arith.constant 0 : index
      %16 = vector.load %arg7[%c0_13, %c0_14] : memref<128x128xf32, #tpu.memory_space<vmem>>, vector<128x128xf32>
      %cst_15 = arith.constant dense<0.000000e+00> : vector<16x128xf32>
      %17 = tpu.matmul %15, %16, %cst_15 {dimension_numbers = #tpu.dot_dimension_numbers<[1], [0], [0], [1], [0, 0, 1, 1], [], []>} : vector<16x128xf32>, vector<128x128xf32>, vector<16x128xf32> -> vector<16x128xf32>
      %c0_16 = arith.constant 0 : index
      %c0_17 = arith.constant 0 : index
      %18 = vector.load %arg9[%c0_16, %c0_17] : memref<16x128xf32, #tpu.memory_space<vmem>>, vector<16x128xf32>
      %c0_18 = arith.constant 0 : index
      %c0_19 = arith.constant 0 : index
      %19 = vector.load %arg5[%c0_18, %c0_19] : memref<1x128xf32, #tpu.memory_space<vmem>>, vector<1x128xf32>
      %20 = vector.broadcast %19 : vector<1x128xf32> to vector<16x128xf32>
      %21 = arith.addf %18, %20 : vector<16x128xf32>
      %22 = arith.addf %21, %17 : vector<16x128xf32>
      %c0_20 = arith.constant 0 : index
      %c0_21 = arith.constant 0 : index
      %23 = vector.load %arg8[%c0_20, %c0_21] : memref<16x128xf32, #tpu.memory_space<vmem>>, vector<16x128xf32>
      tpu.vector_store %arg8[%c0_20, %c0_21], %22 {strides = array<i32>} : memref<16x128xf32, #tpu.memory_space<vmem>>, vector<16x128xf32>,
    } else {
    }
    return
  }
  func.func @transform_0(%arg0: i32, %arg1: i32, %arg2: i32) -> (i32, i32) {
    %c0_i32 = arith.constant 0 : i32
    return %arg0, %arg2 : i32, i32
  }
  func.func @transform_1(%arg0: i32, %arg1: i32, %arg2: i32) -> (i32, i32) {
    %c0_i32 = arith.constant 0 : i32
    return %arg2, %arg1 : i32, i32
  }
  func.func @transform_2(%arg0: i32, %arg1: i32, %arg2: i32) -> (i32, i32) {
    %c0_i32 = arith.constant 0 : i32
    %c0_i32_0 = arith.constant 0 : i32
    return %c0_i32, %arg1 : i32, i32
  }
  func.func @transform_3(%arg0: i32, %arg1: i32, %arg2: i32) -> (i32, i32) {
    %c0_i32 = arith.constant 0 : i32
    %0 = arith.cmpi eq, %arg1, %c0_i32 : i32
    %c1_i32 = arith.constant 1 : i32
    %1 = arith.select %0, %arg2, %c1_i32 : i32
    %c0_i32_0 = arith.constant 0 : i32
    %c0_i32_1 = arith.constant 0 : i32
    return %1, %c0_i32_0 : i32, i32
  }
  func.func @transform_4(%arg0: i32, %arg1: i32, %arg2: i32) -> (i32, i32) {
    %c0_i32 = arith.constant 0 : i32
    %c0_i32_0 = arith.constant 0 : i32
    return %c0_i32, %arg1 : i32, i32
  }
  func.func @transform_5(%arg0: i32, %arg1: i32, %arg2: i32) -> (i32, i32) {
    %c0_i32 = arith.constant 0 : i32
    return %arg0, %arg1 : i32, i32
  }
}

</mosaic_0001>

<bundles_post_ra>
// kernel: lora_qkv_forward.1
= control target key start
LH: loop header
LB: loop body
LE: loop exit
PB: predicated region body
PF: predicated region fallthrough
CT: control target
= control target key end

     0   :  { %s1964_s0 = inlined_call_operand.vmem [shape: f32[16,256], index: 0, kind: input, shape index: {}]   ;;  %s1965_s1 = inlined_call_operand.vmem [shape: f32[256,384], index: 1, kind: input, shape index: {}]   ;;  %s1966_s2 = inlined_call_operand.vmem [shape: f32[1,384], index: 2, kind: input, shape index: {}]   ;;  %s1967_s3 = inlined_call_operand.vmem [shape: f32[256,128], index: 3, kind: input, shape index: {}]   ;;  %s1968_s4 = inlined_call_operand.vmem [shape: f32[128,384], index: 4, kind: input, shape index: {}]   ;;  %s1969_s5 = inlined_call_operand.hbm [shape: f32[16,384], index: 5, kind: output, shape index: {}]  }
   0x1   :  { %1975 = sst [smem:[#allocation17_spill]] %s1964_s0 }
   0x2   :  { %1976 = sst [smem:[#allocation18_spill]] %s1965_s1 }
   0x3   :  { %1977 = sst [smem:[#allocation19_spill]] %s1968_s4 }
   0x4   :  { %1978 = sst [smem:[#allocation20_spill]] %s1969_s5 }
   0x5   :  { %10 = vsyncpa [#allocation8], 0 }
   0x6   :  { %12 = vsyncpa [#allocation8 + $0x1], 0  ;;  %s1613_s18 = smov 0   ;;  %s1615_s19 = smov 0  }
   0x7   :  { %s1617_s20 = smov 0   ;;  %s1619_s21 = smov 0  }
   0x8   :  { %s1621_s22 = smov 0   ;;  %s1623_s23 = smov 0  }
   0x9   :  { %s1625_s24 = smov 0   ;;  %s1627_s25 = smov 0  }
   0xa   :  { %s1629_s26 = smov 0   ;;  %s1631_s27 = smov 0  }
   0xb   :  { %s1633_s28 = smov 0   ;;  %s1635_s29 = smov 0  }
   0xc LB: > { %1979 = sst [smem:[#allocation10_spill]] %s1555_s24  ;;  %s1057_s30 = sadd.s32 4294967295, %s1575_s29   ;;  %s1575_s29 = sphi %s1635_s29, %s18_s29   ;;  %s1571_s28 = sphi %s1633_s28, %s2010_s28   ;;  %s1567_s27 = sphi %s1631_s27, %s2009_s27   ;;  %s1563_s26 = sphi %s1629_s26, %s2008_s26   ;;  %s1559_s25 = sphi %s1627_s25, %s2007_s25   ;;  %s1555_s24 = sphi %s1625_s24, %s1999_s24   ;;  %s1551_s23 = sphi %s1623_s23, %s1998_s23   ;;  %s1547_s22 = sphi %s1621_s22, %s2006_s22   ;;  %s1543_s21 = sphi %s1619_s21, %s2005_s21   ;;  %s1539_s20 = sphi %s1617_s20, %s2004_s20   ;;  %s1535_s19 = sphi %s1615_s19, %s2003_s19   ;;  %s1531_s18 = sphi %s1613_s18, %s2002_s18  }
   0xd   : > { %s1058_s6 = sadd.s32 4294967294, %s1575_s29   ;;  %s30_s7 = sadd.s32 1, %s1567_s27 }
   0xe   : > { %s33_s8 = sadd.s32 1, %s1571_s28  ;;  %p31_p0 = scmp.ge.s32.totalorder %s30_s7, 2 }
   0xf   : > { %s46_s9 = sadd.s32 1, %s1555_s24  ;;  %p53_p1 = scmp.ne.s32.totalorder %s1555_s24, %s1551_s23 }
  0x10   : > { %p54_p2 = scmp.eq.s32.totalorder %s1575_s29, 0  ;;  %s2012_s7 = smov (%p31_p0, %s30_s7), 0 }
  0x11   : > { %1980 = sst [smem:[#allocation11_spill]] %s2012_s7  ;;  %s2014_s8 = smov (!%p31_p0, %s33_s8), %s1571_s28 }
  0x12   : > { %s42_s10 = ssub.s32 %s1567_s27, %s2012_s7  ;;  %p1688_p3 = por %p54_p2, %p53_p1 }
  0x13   : > { %p35_p4 = scmp.ge.s32.totalorder %s2014_s8, 3  ;;  %p44_p5 = scmp.eq.s32.totalorder %s42_s10, 0 }
  0x14   : > { %s74_s12 = sadd.s32 1, %s1547_s22  ;;  %p81_p6 = scmp.ne.s32.totalorder %s1547_s22, %s1543_s21 }
  0x15   : > { %s2016_s8 = smov (%p35_p4, %s2014_s8), 0  ;;  %s156_s17 = sadd.s32 1, %s1539_s20 }
  0x16   : > { %1982 = sst [smem:[#allocation12_spill]] %s2016_s8  ;;  %s70_s14 = ssub.s32 %s1571_s28, %s2016_s8 }
  0x17   : > { %s1698_s13 = scalar_select %p44_p5, %s1555_s24, %s46_s9  }
  0x18   : > { %p1704_p7 = por %p81_p6, %p54_p2  ;;  %s71_s16 = sor.u32 %s70_s14, %s42_s10 }
  0x19   : > { %1983 = sst [smem:[#allocation13_spill]] %s1698_s13  ;;  %p154_p8 = scmp.eq.s32.totalorder %s70_s14, 0 }
  0x1a   : > { %p72_p9 = scmp.eq.s32.totalorder %s71_s16, 0  ;;  %p163_p10 = scmp.ne.s32.totalorder %s1539_s20, %s1535_s19 }
  0x1b   : > { %s1710_s7 = scalar_select %p154_p8, %s1539_s20, %s156_s17  }
  0x1c   : > { %s1713_s5 = scalar_select %p72_p9, %s1547_s22, %s74_s12  }
  0x1d   : > { %1985 = sst [smem:[#allocation14_spill]] %s1710_s7  ;;  %p195_p11 = scmp.eq.s32.totalorder %s1057_s30, 5 }
  0x1e   : > { %1986 = sst [smem:[#allocation15_spill]] %s1713_s5  ;;  %p200_p12 = scmp.ne.s32.totalorder %s1535_s19, %s1531_s18 }
  0x1f   : > { %p201_p13 = scmp.eq.s32.totalorder %s1058_s6, 5  ;;  %p1721_p0 = por %p163_p10, %p54_p2 }
  0x20   : > { %p1725_p1 = por %p195_p11, %p163_p10  ;;  %p1060_p5 = scmp.ge.s32.totalorder %s1575_s29, 6 }
  0x21   : > { %p1729_p4 = por %p201_p13, %p200_p12 }
  0x22   : > { %217 = sbr.rel (%p1060_p5) target bundleno = 88 (0x58), region = 16 }
  0x23   : > { %s1989_s10 = scalar_select %p1729_p4, 1, 0 }
  0x25   : > { %1990 = sst [smem:[#allocation16_spill]] %s1989_s10 }
  0x29   : > { %220 = sbr.rel (!%p1688_p3) target bundleno = 52 (0x34), region = 20  ;;  %s222_s30 = sand.u32 (%p1688_p3), 1, %s1555_s24  }
  0x2a   : > { %s1062_s6 = sshll.u32 (%p1688_p3), %s1567_s27, 3  ;;  %s1061_s12 = sshll.u32 (%p1688_p3), %s222_s30, 4 }
  0x2b   : > { %s1991_s0 = sld [smem:[#allocation17_spill]] (%p1688_p3)  ;;  %s224_s13 = scalar_lea.vmem (%p1688_p3), [#allocation4], %s1061_s12 }
  0x31   : > { %s229_s17 = scalar_lea.vmem %s1991_s0, %s1062_s6 }
  0x32   : > { %v259_v0 = vld [vmem:[%s229_s17] sm:$0xff]  ;;  %v261_v1 = vld [vmem:[%s229_s17 + $0x10] sm:$0xff] }
  0x33   : > { %260 = vst [vmem:[%s224_s13] sm:$0xff] %v259_v0  ;;  %262 = vst [vmem:[%s224_s13 + $0x8] sm:$0xff] %v261_v1 }
  0x34 PF: > { %268 = sbr.rel (!%p1704_p7) target bundleno = 70 (0x46), region = 58  ;;  %s270_s11 = sand.u32 (%p1704_p7), 1, %s1547_s22  }
  0x35   : > { %s1340_s24 = smul.u32 (%p1704_p7), 48, %s1567_s27  ;;  %s1063_s5 = sshll.u32 (%p1704_p7), %s270_s11, 7 }
  0x36   : > { %s1992_s1 = sld [smem:[#allocation18_spill]] (%p1704_p7)  ;;  %s272_s13 = scalar_lea.vmem (%p1704_p7), [#allocation5], %s1063_s5 }
  0x37   : > { %s275_s30 = sadd.s32 (%p1704_p7), %s1571_s28, %s1340_s24 }
  0x38   : > { %s1066_s7 = sshll.u32 (%p1704_p7), %s275_s30, 3 }
  0x3c   : > { %s1749_s6 = scalar_lea.vmem %s1992_s1, %s1066_s7 }
  0x3d   : > { %v335_v2 = vld [vmem:[%s1749_s6] sm:$0xff]  ;;  %v337_v3 = vld [vmem:[%s1749_s6 + $0x18] sm:$0xff]  ;;  %v339_v4 = vld [vmem:[%s1749_s6 + $0x30] sm:$0xff] }
  0x3e   : > { %336 = vst [vmem:[%s272_s13] sm:$0xff] %v335_v2  ;;  %338 = vst [vmem:[%s272_s13 + $0x8] sm:$0xff] %v337_v3  ;;  %v341_v5 = vld [vmem:[%s1749_s6 + $0x48] sm:$0xff]  ;;  %v343_v6 = vld [vmem:[%s1749_s6 + $0x60] sm:$0xff] }
  0x3f   : > { %340 = vst [vmem:[%s272_s13 + $0x10] sm:$0xff] %v339_v4  ;;  %v345_v7 = vld [vmem:[%s1749_s6 + $0x78] sm:$0xff]  ;;  %342 = vst [vmem:[%s272_s13 + $0x18] sm:$0xff] %v341_v5  ;;  %v347_v8 = vld [vmem:[%s1749_s6 + $0x90] sm:$0xff] }
  0x40   : > { %344 = vst [vmem:[%s272_s13 + $0x20] sm:$0xff] %v343_v6  ;;  %346 = vst [vmem:[%s272_s13 + $0x28] sm:$0xff] %v345_v7  ;;  %v349_v9 = vld [vmem:[%s1749_s6 + $0xa8] sm:$0xff]  ;;  %v351_v10 = vld [vmem:[%s1749_s6 + $0xc0] sm:$0xff] }
  0x41   : > { %348 = vst [vmem:[%s272_s13 + $0x30] sm:$0xff] %v347_v8  ;;  %350 = vst [vmem:[%s272_s13 + $0x38] sm:$0xff] %v349_v9  ;;  %v353_v11 = vld [vmem:[%s1749_s6 + $0xd8] sm:$0xff]  ;;  %v355_v12 = vld [vmem:[%s1749_s6 + $0xf0] sm:$0xff] }
  0x42   : > { %352 = vst [vmem:[%s272_s13 + $0x40] sm:$0xff] %v351_v10  ;;  %v357_v13 = vld [vmem:[%s1749_s6 + $0x108] sm:$0xff]  ;;  %354 = vst [vmem:[%s272_s13 + $0x48] sm:$0xff] %v353_v11  ;;  %v359_v14 = vld [vmem:[%s1749_s6 + $0x120] sm:$0xff] }
  0x43   : > { %356 = vst [vmem:[%s272_s13 + $0x50] sm:$0xff] %v355_v12  ;;  %358 = vst [vmem:[%s272_s13 + $0x58] sm:$0xff] %v357_v13  ;;  %v361_v15 = vld [vmem:[%s1749_s6 + $0x138] sm:$0xff]  ;;  %v363_v16 = vld [vmem:[%s1749_s6 + $0x150] sm:$0xff] }
  0x44   : > { %360 = vst [vmem:[%s272_s13 + $0x60] sm:$0xff] %v359_v14  ;;  %362 = vst [vmem:[%s272_s13 + $0x68] sm:$0xff] %v361_v15  ;;  %v365_v17 = vld [vmem:[%s1749_s6 + $0x168] sm:$0xff] }
  0x45   : > { %364 = vst [vmem:[%s272_s13 + $0x70] sm:$0xff] %v363_v16  ;;  %366 = vst [vmem:[%s272_s13 + $0x78] sm:$0xff] %v365_v17 }
  0x46 PF: > { %391 = sbr.rel (!%p1721_p0) target bundleno = 88 (0x58), region = 104  ;;  %s393_s5 = sand.u32 (%p1721_p0), 1, %s1539_s20  }
  0x47   : > { %s1068_s24 = sshll.u32 (%p1721_p0), %s1571_s28, 3  ;;  %s1067_s7 = sshll.u32 (%p1721_p0), %s393_s5, 7 }
  0x48   : > { %s1993_s4 = sld [smem:[#allocation19_spill]] (%p1721_p0)  ;;  %s395_s9 = scalar_lea.vmem (%p1721_p0), [#allocation6], %s1067_s7 }
  0x4e   : > { %s1774_s12 = scalar_lea.vmem %s1993_s4, %s1068_s24 }
  0x4f   : > { %v455_v18 = vld [vmem:[%s1774_s12] sm:$0xff]  ;;  %v457_v19 = vld [vmem:[%s1774_s12 + $0x18] sm:$0xff]  ;;  %v459_v20 = vld [vmem:[%s1774_s12 + $0x30] sm:$0xff] }
  0x50   : > { %456 = vst [vmem:[%s395_s9] sm:$0xff] %v455_v18  ;;  %458 = vst [vmem:[%s395_s9 + $0x8] sm:$0xff] %v457_v19  ;;  %v461_v21 = vld [vmem:[%s1774_s12 + $0x48] sm:$0xff]  ;;  %v463_v22 = vld [vmem:[%s1774_s12 + $0x60] sm:$0xff] }
  0x51   : > { %460 = vst [vmem:[%s395_s9 + $0x10] sm:$0xff] %v459_v20  ;;  %v465_v23 = vld [vmem:[%s1774_s12 + $0x78] sm:$0xff]  ;;  %462 = vst [vmem:[%s395_s9 + $0x18] sm:$0xff] %v461_v21  ;;  %v467_v24 = vld [vmem:[%s1774_s12 + $0x90] sm:$0xff] }
  0x52   : > { %464 = vst [vmem:[%s395_s9 + $0x20] sm:$0xff] %v463_v22  ;;  %466 = vst [vmem:[%s395_s9 + $0x28] sm:$0xff] %v465_v23  ;;  %v469_v25 = vld [vmem:[%s1774_s12 + $0xa8] sm:$0xff]  ;;  %v471_v26 = vld [vmem:[%s1774_s12 + $0xc0] sm:$0xff] }
  0x53   : > { %468 = vst [vmem:[%s395_s9 + $0x30] sm:$0xff] %v467_v24  ;;  %470 = vst [vmem:[%s395_s9 + $0x38] sm:$0xff] %v469_v25  ;;  %v473_v27 = vld [vmem:[%s1774_s12 + $0xd8] sm:$0xff]  ;;  %v475_v28 = vld [vmem:[%s1774_s12 + $0xf0] sm:$0xff] }
  0x54   : > { %472 = vst [vmem:[%s395_s9 + $0x40] sm:$0xff] %v471_v26  ;;  %v477_v29 = vld [vmem:[%s1774_s12 + $0x108] sm:$0xff]  ;;  %474 = vst [vmem:[%s395_s9 + $0x48] sm:$0xff] %v473_v27  ;;  %v479_v30 = vld [vmem:[%s1774_s12 + $0x120] sm:$0xff] }
  0x55   : > { %476 = vst [vmem:[%s395_s9 + $0x50] sm:$0xff] %v475_v28  ;;  %478 = vst [vmem:[%s395_s9 + $0x58] sm:$0xff] %v477_v29  ;;  %v481_v31 = vld [vmem:[%s1774_s12 + $0x138] sm:$0xff]  ;;  %v483_v32 = vld [vmem:[%s1774_s12 + $0x150] sm:$0xff] }
  0x56   : > { %480 = vst [vmem:[%s395_s9 + $0x60] sm:$0xff] %v479_v30  ;;  %482 = vst [vmem:[%s395_s9 + $0x68] sm:$0xff] %v481_v31  ;;  %v485_v33 = vld [vmem:[%s1774_s12 + $0x168] sm:$0xff] }
  0x57   : > { %484 = vst [vmem:[%s395_s9 + $0x70] sm:$0xff] %v483_v32  ;;  %486 = vst [vmem:[%s395_s9 + $0x78] sm:$0xff] %v485_v33 }
  0x58 PF: > { %p1069_p2 = scmp.ge.s32.totalorder %s1575_s29, 1  ;;  %p491_p3 = scmp.lt.s32.totalorder %s1575_s29, 7 }
  0x5a   : > { %p492_p6 = pnand %p1069_p2, %p491_p3 }
  0x5b   : > { %s498_s16 = sand.u32 (!%p492_p6), 1, %s1551_s23   ;;  %s505_s17 = sand.u32 (!%p492_p6), 1, %s1543_s21  }
  0x5c   : > { %495 = sbr.rel (%p492_p6) target bundleno = 895 (0x37f), region = 142  ;;  %s1796_s11 = sshll.u32 (!%p492_p6), %s498_s16, 4 }
  0x5d   : > { %s1071_s30 = sshll.u32 (!%p492_p6), %s505_s17, 7  ;;  %s1799_s14 = sand.u32 (!%p492_p6), 1, %s1535_s19  }
  0x5e   : > { %p559_p7 = scmp.lt.s32.totalorder (!%p492_p6), %s1563_s26, 2  ;;  %s1072_s6 = sshll.u32 (!%p492_p6), %s1799_s14, 7 }
  0x5f   : > { %s1073_s13 = sshll.u32 (!%p492_p6), %s1799_s14, 4  ;;  %p562_p8 = scmp.eq.s32.totalorder (!%p492_p6), %s1563_s26, 0 }
  0x60   : > { %s500_s17 = scalar_lea.vmem (!%p492_p6), [#allocation4], %s1796_s11  ;;  %s1819_s0 = scalar_lea.vmem (!%p492_p6), [#allocation5], %s1071_s30 }
  0x61   : > { %s1821_s1 = scalar_lea.vmem (!%p492_p6), [#allocation6], %s1072_s6  ;;  %s1823_s4 = scalar_lea.vmem (!%p492_p6), [#allocation7], %s1073_s13 }
  0x62   : > { %p1076_p10 = scmp.ne.s32.totalorder (!%p492_p6), %s1559_s25, 0 }
  0x63   : > { %s1805_s5 = scalar_select %p559_p7, %s1563_s26, 2 }
  0x64   : > { %s563_s21 = scalar_select %p562_p8, %s1559_s25, 1 }
  0x65   : > { %s561_s23 = scalar_lea.vmem %s1966_s2, %s1805_s5  ;;  %576 = sbr.rel (%p1076_p10) target bundleno = 108 (0x6c), region = 158  ;;  %v1577_v34 = vmov (!%p1076_p10), 0.0  }
  0x66   : > { %s1074_s15 = sshll.u32 %s563_s21, 4  ;;  %577 = vst [vmem:[#allocation2] sm:$0xff] (!%p1076_p10), %v1577_v34  ;;  %578 = vst [vmem:[#allocation2 + $0x8] sm:$0xff] (!%p1076_p10), %v1577_v34 }
  0x67   : > { %p565_p9 = scmp.lt.s32.totalorder %s1074_s15, 31 }
  0x69   : > { %s2018_s15 = smov (!%p565_p9, %s1074_s15), 31 }
  0x6a   : > { %s1075_s10 = sshll.u32 %s2018_s15, 3 }
  0x6b   : > { %s1816_s16 = scalar_lea.vmem %s1967_s3, %s1075_s10 }
  0x6c PF: > { %v583_v35 = vld [vmem:[%s1819_s0] sm:$0xff]  ;;  %v584_v36 = vld [vmem:[%s1819_s0 + $0x8] sm:$0xff]  ;;  %v585_v37 = vld [vmem:[%s1819_s0 + $0x10] sm:$0xff]  ;;  %p1077_p11 = scmp.ne.s32.totalorder %s1563_s26, 0 }
  0x6d   : > { %v1244_v38 = vpack.c.bf16 %v584_v36, %v583_v35  ;;  %v586_v39 = vld [vmem:[%s1819_s0 + $0x18] sm:$0xff]  ;;  %v587_v41 = vld [vmem:[%s1819_s0 + $0x20] sm:$0xff]  ;;  %v588_v42 = vld [vmem:[%s1819_s0 + $0x28] sm:$0xff] }
  0x6e   : > { %v1248_v40 = vpack.c.bf16 %v586_v39, %v585_v37  ;;  %v1252_v43 = vpack.c.bf16 %v588_v42, %v587_v41  ;;  %v579_v44 = vld [vmem:[%s500_s17] sm:$0xff]  ;;  %v590_v46 = vld [vmem:[%s1819_s0 + $0x38] sm:$0xff]  ;;  %v592_v49 = vld [vmem:[%s1819_s0 + $0x48] sm:$0xff] }
  0x6f   : > { %1245 = vmatprep.subr.bf16.mxu0 %v1244_v38  ;;  %v589_v45 = vld [vmem:[%s1819_s0 + $0x30] sm:$0xff]  ;;  %1171 = vmatprep.mubr.f32.mxu0 %v579_v44  ;;  %v591_v48 = vld [vmem:[%s1819_s0 + $0x40] sm:$0xff]  ;;  %v594_v52 = vld [vmem:[%s1819_s0 + $0x58] sm:$0xff] }
  0x70   : > { %1247 = vmatpush3.bf16.msra.mxu0 %v1244_v38  ;;  %v1256_v47 = vpack.c.bf16 %v590_v46, %v589_v45  ;;  %v1260_v50 = vpack.c.bf16 %v592_v49, %v591_v48  ;;  %v593_v51 = vld [vmem:[%s1819_s0 + $0x50] sm:$0xff]  ;;  %v595_v54 = vld [vmem:[%s1819_s0 + $0x60] sm:$0xff]  ;;  %v596_v55 = vld [vmem:[%s1819_s0 + $0x68] sm:$0xff] }
  0x71   : > { %1249 = vmatprep.subr.bf16.mxu0 %v1248_v40  ;;  %v1264_v53 = vpack.c.bf16 %v594_v52, %v593_v51  ;;  %v1268_v56 = vpack.c.bf16 %v596_v55, %v595_v54  ;;  %v597_v57 = vld [vmem:[%s1819_s0 + $0x70] sm:$0xff]  ;;  %v598_v58 = vld [vmem:[%s1819_s0 + $0x78] sm:$0xff]  ;;  %v582_v61 = vld [vmem:[#allocation2 + $0x8] sm:$0xff] }
  0x72   : > { %v1272_v59 = vpack.c.bf16 %v598_v58, %v597_v57  ;;  %v580_v60 = vld [vmem:[%s500_s17 + $0x8] sm:$0xff]  ;;  %v581_v62 = vld [vmem:[#allocation2] sm:$0xff] }
  0x74   : > { %1251 = vmatpush3.bf16.msra.mxu0 %v1248_v40 }
  0x75   : > { %1253 = vmatprep.subr.bf16.mxu0 %v1252_v43 }
  0x78   : > { %1255 = vmatpush3.bf16.msra.mxu0 %v1252_v43 }
  0x79   : > { %1257 = vmatprep.subr.bf16.mxu0 %v1256_v47 }
  0x7c   : > { %1259 = vmatpush3.bf16.msra.mxu0 %v1256_v47 }
  0x7d   : > { %1261 = vmatprep.subr.bf16.mxu0 %v1260_v50 }
  0x80   : > { %1263 = vmatpush3.bf16.msra.mxu0 %v1260_v50 }
  0x81   : > { %1265 = vmatprep.subr.bf16.mxu0 %v1264_v53 }
  0x84   : > { %1267 = vmatpush3.bf16.msra.mxu0 %v1264_v53 }
  0x85   : > { %1269 = vmatprep.subr.bf16.mxu0 %v1268_v56 }
  0x88   : > { %1271 = vmatpush3.bf16.msra.mxu0 %v1268_v56 }
  0x89   : > { %1273 = vmatprep.subr.bf16.mxu0 %v1272_v59 }
  0x8c   : > { %1275 = vmatpush3.bf16.msra.mxu0 %v1272_v59 }
  0x8f   : > { %1172 = vmatmul.mubr.f32.vlgmr.msra.gmra.mrb[0].mxu0 %v580_v60 }
 0x160   : > { %681 = sbr.rel (%p1077_p11) target bundleno = 617 (0x269), region = 162 }
 0x162   : > { %v1173_v63 = vpop.f32.mrb[0].mxu0 }
 0x163   : > { %v675_v0 = vadd.f32 %v1173_v63, %v582_v61  ;;  %v665_v1 = vpop.f32.mrb[1].mxu0 }
 0x164   : > { %v674_v2 = vadd.f32 %v665_v1, %v581_v62 }
 0x165   : > { %677 = vst [vmem:[#allocation2 + $0x8] sm:$0xff] %v675_v0 }
 0x166   : > { %676 = vst [vmem:[#allocation2] sm:$0xff] %v674_v2 }
 0x167   : > { %684 = sbr.rel (%p1076_p10) target bundleno = 366 (0x16e), region = 166  ;;  %v1578_v3 = vmov (!%p1076_p10), 0.0  }
 0x168   : > { %685 = vst [vmem:[#allocation3] sm:$0xff] (!%p1076_p10), %v1578_v3  ;;  %686 = vst [vmem:[#allocation3 + $0x8] sm:$0xff] (!%p1076_p10), %v1578_v3 }
 0x16e PF: > { %v689_v4 = vld [vmem:[%s1816_s16] sm:$0xff]  ;;  %v690_v5 = vld [vmem:[%s1816_s16 + $0x8] sm:$0xff]  ;;  %v691_v6 = vld [vmem:[%s1816_s16 + $0x10] sm:$0xff]  ;;  %1206 = vmatprep.mubr.f32.mxu0 %v579_v44 }
 0x16f   : > { %v1276_v7 = vpack.c.bf16 %v690_v5, %v689_v4  ;;  %v692_v8 = vld [vmem:[%s1816_s16 + $0x18] sm:$0xff]  ;;  %v693_v10 = vld [vmem:[%s1816_s16 + $0x20] sm:$0xff]  ;;  %v694_v11 = vld [vmem:[%s1816_s16 + $0x28] sm:$0xff] }
 0x170   : > { %v1280_v9 = vpack.c.bf16 %v692_v8, %v691_v6  ;;  %v1284_v12 = vpack.c.bf16 %v694_v11, %v693_v10  ;;  %v695_v13 = vld [vmem:[%s1816_s16 + $0x30] sm:$0xff]  ;;  %v696_v14 = vld [vmem:[%s1816_s16 + $0x38] sm:$0xff]  ;;  %v697_v16 = vld [vmem:[%s1816_s16 + $0x40] sm:$0xff] }
 0x171   : > { %1277 = vmatprep.subr.bf16.mxu0 %v1276_v7  ;;  %v1288_v15 = vpack.c.bf16 %v696_v14, %v695_v13  ;;  %v698_v17 = vld [vmem:[%s1816_s16 + $0x48] sm:$0xff]  ;;  %v699_v19 = vld [vmem:[%s1816_s16 + $0x50] sm:$0xff]  ;;  %v700_v20 = vld [vmem:[%s1816_s16 + $0x58] sm:$0xff] }
 0x172   : > { %1279 = vmatpush3.bf16.msra.mxu0 %v1276_v7  ;;  %v1292_v18 = vpack.c.bf16 %v698_v17, %v697_v16  ;;  %v1296_v21 = vpack.c.bf16 %v700_v20, %v699_v19  ;;  %v701_v22 = vld [vmem:[%s1816_s16 + $0x60] sm:$0xff]  ;;  %v702_v23 = vld [vmem:[%s1816_s16 + $0x68] sm:$0xff]  ;;  %v703_v25 = vld [vmem:[%s1816_s16 + $0x70] sm:$0xff] }
 0x173   : > { %1281 = vmatprep.subr.bf16.mxu0 %v1280_v9  ;;  %v1300_v24 = vpack.c.bf16 %v702_v23, %v701_v22  ;;  %v704_v26 = vld [vmem:[%s1816_s16 + $0x78] sm:$0xff]  ;;  %v687_v29 = vld [vmem:[#allocation3] sm:$0xff] }
 0x174   : > { %v1304_v27 = vpack.c.bf16 %v704_v26, %v703_v25  ;;  %v688_v28 = vld [vmem:[#allocation3 + $0x8] sm:$0xff] }
 0x176   : > { %1283 = vmatpush3.bf16.msra.mxu0 %v1280_v9 }
 0x177   : > { %1285 = vmatprep.subr.bf16.mxu0 %v1284_v12 }
 0x17a   : > { %1287 = vmatpush3.bf16.msra.mxu0 %v1284_v12 }
 0x17b   : > { %1289 = vmatprep.subr.bf16.mxu0 %v1288_v15 }
 0x17e   : > { %1291 = vmatpush3.bf16.msra.mxu0 %v1288_v15 }
 0x17f   : > { %1293 = vmatprep.subr.bf16.mxu0 %v1292_v18 }
 0x182   : > { %1295 = vmatpush3.bf16.msra.mxu0 %v1292_v18 }
 0x183   : > { %1297 = vmatprep.subr.bf16.mxu0 %v1296_v21 }
 0x186   : > { %1299 = vmatpush3.bf16.msra.mxu0 %v1296_v21 }
 0x187   : > { %1301 = vmatprep.subr.bf16.mxu0 %v1300_v24 }
 0x18a   : > { %1303 = vmatpush3.bf16.msra.mxu0 %v1300_v24 }
 0x18b   : > { %1305 = vmatprep.subr.bf16.mxu0 %v1304_v27 }
 0x18e   : > { %1307 = vmatpush3.bf16.msra.mxu0 %v1304_v27 }
 0x191   : > { %1207 = vmatmul.mubr.f32.vlgmr.msra.gmra.mrb[0].mxu0 %v580_v60 }
 0x264   : > { %v1208_v30 = vpop.f32.mrb[0].mxu0 }
 0x265   : > { %v781_v31 = vadd.f32 %v1208_v30, %v688_v28  ;;  %v771_v32 = vpop.f32.mrb[1].mxu0 }
 0x266   : > { %v780_v33 = vadd.f32 %v771_v32, %v687_v29 }
 0x267   : > { %783 = vst [vmem:[#allocation3 + $0x8] sm:$0xff] %v781_v31 }
 0x268   : > { %782 = vst [vmem:[#allocation3] sm:$0xff] %v780_v33 }
 0x269 PF: > { %p1079_p12 = scmp.ne.s32.totalorder %s1559_s25, 1 }
 0x26a   : > { %v790_v34 = vld [vmem:[%s1821_s1] sm:$0xff] (!%p1079_p12)  ;;  %v791_v35 = vld [vmem:[%s1821_s1 + $0x8] sm:$0xff] (!%p1079_p12)  ;;  %v792_v36 = vld [vmem:[%s1821_s1 + $0x10] sm:$0xff] (!%p1079_p12) }
 0x26b   : > { %787 = sbr.rel (%p1079_p12) target bundleno = 869 (0x365), region = 170  ;;  %v1308_v37 = vpack.c.bf16 (!%p1079_p12), %v791_v35, %v790_v34  ;;  %v793_v38 = vld [vmem:[%s1821_s1 + $0x18] sm:$0xff] (!%p1079_p12)  ;;  %v794_v40 = vld [vmem:[%s1821_s1 + $0x20] sm:$0xff] (!%p1079_p12)  ;;  %v795_v41 = vld [vmem:[%s1821_s1 + $0x28] sm:$0xff] (!%p1079_p12) }
 0x26c   : > { %v1312_v39 = vpack.c.bf16 (!%p1079_p12), %v793_v38, %v792_v36  ;;  %v1316_v42 = vpack.c.bf16 (!%p1079_p12), %v795_v41, %v794_v40  ;;  %v796_v44 = vld [vmem:[%s1821_s1 + $0x30] sm:$0xff] (!%p1079_p12)  ;;  %v797_v45 = vld [vmem:[%s1821_s1 + $0x38] sm:$0xff] (!%p1079_p12)  ;;  %v798_v47 = vld [vmem:[%s1821_s1 + $0x40] sm:$0xff] (!%p1079_p12) }
 0x26d   : > { %1309 = vmatprep.subr.bf16.mxu0 (!%p1079_p12), %v1308_v37  ;;  %v1320_v46 = vpack.c.bf16 (!%p1079_p12), %v797_v45, %v796_v44  ;;  %v799_v48 = vld [vmem:[%s1821_s1 + $0x48] sm:$0xff] (!%p1079_p12)  ;;  %v800_v50 = vld [vmem:[%s1821_s1 + $0x50] sm:$0xff] (!%p1079_p12)  ;;  %v801_v51 = vld [vmem:[%s1821_s1 + $0x58] sm:$0xff] (!%p1079_p12) }
 0x26e   : > { %1311 = vmatpush3.bf16.msra.mxu0 (!%p1079_p12), %v1308_v37  ;;  %v1324_v49 = vpack.c.bf16 (!%p1079_p12), %v799_v48, %v798_v47  ;;  %v1328_v52 = vpack.c.bf16 (!%p1079_p12), %v801_v51, %v800_v50  ;;  %v802_v53 = vld [vmem:[%s1821_s1 + $0x60] sm:$0xff] (!%p1079_p12)  ;;  %v803_v54 = vld [vmem:[%s1821_s1 + $0x68] sm:$0xff] (!%p1079_p12)  ;;  %v804_v56 = vld [vmem:[%s1821_s1 + $0x70] sm:$0xff] (!%p1079_p12) }
 0x26f   : > { %1313 = vmatprep.subr.bf16.mxu0 (!%p1079_p12), %v1312_v39  ;;  %v788_v43 = vld [vmem:[#allocation3] sm:$0xff] (!%p1079_p12)  ;;  %v1332_v55 = vpack.c.bf16 (!%p1079_p12), %v803_v54, %v802_v53  ;;  %v805_v57 = vld [vmem:[%s1821_s1 + $0x78] sm:$0xff] (!%p1079_p12)  ;;  %v882_v60 = vld [vmem:[#allocation2 + $0x8] sm:$0xff] (!%p1079_p12) }
 0x270   : > { %1241 = vmatprep.mubr.f32.mxu0 (!%p1079_p12), %v788_v43  ;;  %v1336_v58 = vpack.c.bf16 (!%p1079_p12), %v805_v57, %v804_v56  ;;  %v789_v59 = vld [vmem:[#allocation3 + $0x8] sm:$0xff] (!%p1079_p12)  ;;  %v1080_v61 = vld [vmem:[%s561_s23] ss:$0 sm:$0xff] (!%p1079_p12) }
 0x271   : > { %v881_v62 = vld [vmem:[#allocation2] sm:$0xff] (!%p1079_p12)  ;;  %v891_v63 = vadd.f32 (!%p1079_p12), %v1080_v61, %v882_v60 }
 0x272   : > { %1315 = vmatpush3.bf16.msra.mxu0 %v1312_v39  ;;  %v890_v0 = vadd.f32 %v1080_v61, %v881_v62 }
 0x273   : > { %1317 = vmatprep.subr.bf16.mxu0 %v1316_v42 }
 0x276   : > { %1319 = vmatpush3.bf16.msra.mxu0 %v1316_v42 }
 0x277   : > { %1321 = vmatprep.subr.bf16.mxu0 %v1320_v46 }
 0x27a   : > { %1323 = vmatpush3.bf16.msra.mxu0 %v1320_v46 }
 0x27b   : > { %1325 = vmatprep.subr.bf16.mxu0 %v1324_v49 }
 0x27e   : > { %1327 = vmatpush3.bf16.msra.mxu0 %v1324_v49 }
 0x27f   : > { %1329 = vmatprep.subr.bf16.mxu0 %v1328_v52 }
 0x282   : > { %1331 = vmatpush3.bf16.msra.mxu0 %v1328_v52 }
 0x283   : > { %1333 = vmatprep.subr.bf16.mxu0 %v1332_v55 }
 0x286   : > { %1335 = vmatpush3.bf16.msra.mxu0 %v1332_v55 }
 0x287   : > { %1337 = vmatprep.subr.bf16.mxu0 %v1336_v58 }
 0x28a   : > { %1339 = vmatpush3.bf16.msra.mxu0 %v1336_v58 }
 0x28d   : > { %1242 = vmatmul.mubr.f32.vlgmr.msra.gmra.mrb[0].mxu0 %v789_v59 }
 0x360   : > { %v1243_v1 = vpop.f32.mrb[0].mxu0 }
 0x361   : > { %v893_v2 = vadd.f32 %v1243_v1, %v891_v63  ;;  %v872_v3 = vpop.f32.mrb[1].mxu0 }
 0x362   : > { %v892_v4 = vadd.f32 %v890_v0, %v872_v3 }
 0x363   : > { %895 = vst [vmem:[%s1823_s4 + $0x8] sm:$0xff] %v893_v2 }
 0x364   : > { %894 = vst [vmem:[%s1823_s4] sm:$0xff] %v892_v4 }
 0x365 PF: > { %s1082_s1 = sshll.u32 %s1563_s26, 7  ;;  %s1994_s6 = sld [smem:[#allocation20_spill]] }
 0x366   : > { %s912_s5 = sshll.u32 %s1823_s4, 4  ;;  %s897_s24 = scalar_lea.sflag [#allocation8], %s1799_s14  ;;  %s1898_s5 = int_to_ptr.vmem [resolvable:$true] %s912_s5 }
 0x367   : > { %s1449_s7 = scalar_lea.vmem %s1898_s5, 256  ;;  %s1579_s23 = smov [#allocation7]  }
 0x368   : > { %p1450_p13 = scmp.ne.s32.totalorder %s1898_s5, %s1449_s7  ;;  %s1453_s21 = sshll.u32 %s1579_s23, 4  ;;  %s1454_s21 = int_to_ptr.vmem [resolvable:$false] %s1453_s21 }
 0x369   : > { %s1455_s26 = scalar_lea.vmem %s1454_s21, 512  ;;  %p1456_p2 = scmp.lt.s32.totalorder %s1898_s5, %s1454_s21 }
 0x36a   : > { %p1451_p0 = pnand %p1450_p13, %p1725_p1  ;;  %p1457_p3 = scmp.lt.s32.totalorder %s1455_s26, %s1449_s7 }
 0x36b   : > { %s1895_s13 = scalar_lea.hbm %s1994_s6, %s1082_s1 }
 0x36c   : > { %p1452_p5 = pneg %p1451_p0  ;;  %p1458_p6 = por %p1457_p3, %p1456_p2 }
 0x36e   : > { %p1459_p7 = pnand %p1458_p6, %p1452_p5 }
 0x370   : > { %1462 = shalt.err (!%p1459_p7)
}
 0x371   : > { %s1463_s4 = scalar_lea.hbm %s1895_s13, 256  ;;  %s1467_s12 = scalar_lea.hbm %s1994_s6, 768 }
 0x372   : > { %p1464_p8 = scmp.ne.s32.totalorder %s1895_s13, %s1463_s4  ;;  %p1468_p11 = scmp.lt.u32.totalorder %s1895_s13, %s1994_s6 }
 0x373   : > { %p1469_p12 = scmp.lt.u32.totalorder %s1467_s12, %s1463_s4  ;;  %p1471_p0 = scmp.lt.u32.totalorder %s1463_s4, %s1895_s13 }
 0x374   : > { %p1465_p9 = pnand %p1464_p8, %p1725_p1 }
 0x375   : > { %p1470_p13 = por %p1469_p12, %p1468_p11 }
 0x376   : > { %p1466_p10 = pneg %p1465_p9 }
 0x377   : > { %p1472_p5 = por %p1471_p0, %p1470_p13 }
 0x379   : > { %p1473_p2 = pnand %p1472_p5, %p1466_p10 }
 0x37b   : > { %1476 = shalt.err (!%p1473_p2)
}
 0x37c   : > { %s1580_s17 = smov 128   ;;  %s1581_s0 = smov 384  }
 0x37d   : > { %s1582_s25 = smov 8  }
 0x37e   : > { %1341 = dma.vmem_to_hbm [thread:$0]  (%p1725_p1), %s1898_s5, 256, %s1895_s13, %s897_s24, %s1580_s17, %s1581_s0, %s1582_s25  }
 0x37f PF: > { %p1347_p3 = scmp.ge.s32.totalorder %s1575_s29, 2  ;;  %s927_s11 = sand.u32 1, %s1531_s18  }
 0x380   : > { %s928_s30 = scalar_lea.sflag [#allocation8], %s927_s11 }
 0x381   : > { %p1344_p6 = pnand %p1347_p3, %p1729_p4 }
 0x383   : > { %1526 = dma.done.wait (!%p1344_p6), %s928_s30, 256  }
 0x384   : > { %1528 = vsyncadd (!%p1344_p6), %s928_s30, 4294967040  ;;  %s18_s29 = sadd.s32 1, %s1575_s29   ;;  %s1996_s7 = sld [smem:[#allocation14_spill]] }
 0x385   : > { %p15_p7 = scmp.ge.s32.totalorder %s18_s29, 8   ;;  %s1997_s8 = sld [smem:[#allocation15_spill]] }
 0x386   : > { %s1998_s23 = sld [smem:[#allocation10_spill]]  ;;  %s1999_s24 = sld [smem:[#allocation13_spill]] }
 0x387   : > { %s2000_s14 = sld [smem:[#allocation11_spill]]  ;;  %s2001_s13 = sld [smem:[#allocation12_spill]] }
 0x388   : > { %s2002_s18 = smov %s1535_s19  ;;  %s2003_s19 = smov %s1539_s20 }
 0x389   : > { %s2005_s21 = smov %s1547_s22  ;;  %s2007_s25 = smov %s1567_s27 }
 0x38a   : > { %s2004_s20 = smov %s1996_s7  ;;  %s2008_s26 = smov %s1571_s28 }
 0x38b   : > { %s2006_s22 = smov %s1997_s8  ;;  %17 = sbr.rel (!%p15_p7) target bundleno = 12 (0xc), region = 232 }
 0x38d   : > { %s2009_s27 = smov %s2000_s14  ;;  %s2010_s28 = smov %s2001_s13 }
 0x392   :  { %933 = vsyncpa [#allocation8], 1 }
 0x393   :  { %935 = vsyncpa [#allocation8 + $0x1], 1 }

</bundles_post_ra>
